<compile_context>
chip_gen: v5e
topology: v5e:2x2
jax: 0.10.0
libtpu: 0.0.40
codegen_flags: <defaults>
</compile_context>

<pallas_src>
import functools

import jax
import jax.numpy as jnp
import numpy as np
from jax.experimental import pallas as pl
from jax.experimental.pallas import tpu as pltpu


# ----------------------------------------------------------------------------
# Fused MHA kernel: whole (batch_block) batch slab per grid step, all VMEM.
# ----------------------------------------------------------------------------
def _mha_kernel(q_ref, k_ref, v_ref, wq_ref, wk_ref, wv_ref, wfc_ref, p_ref,
                o_ref, *, n_head, d_k, d_v, d_model, len_q, len_k,
                batch_block, eps, mm_dtype):
    hd_k = n_head * d_k
    hd_v = n_head * d_v
    rows_q = batch_block * len_q
    rows_k = batch_block * len_k

    # Packed small params: rows = [bq, bk, bv, bfc, gamma, beta, pad, pad].
    pp = p_ref[...]
    bq = pp[0:1, :hd_k]
    bk = pp[1:2, :hd_k]
    bv = pp[2:3, :hd_v]
    bfc = pp[3:4, :d_model]
    gamma = pp[4:5, :d_model]
    beta = pp[5:6, :d_model]

    # Flatten (Bt, L, d_model) -> (Bt*L, d_model); sublane-aligned (L=8) => free.
    q_in = q_ref[...].reshape(rows_q, d_model)          # f32, also the residual
    k_in = k_ref[...].reshape(rows_k, d_model)
    v_in = v_ref[...].reshape(rows_k, d_model)

    # Projections over the whole folded batch (one MXU pass each). Weights are
    # pre-transposed to (d_in, d_out); 1/temperature is folded into wq/bq.
    qp = jnp.dot(q_in.astype(mm_dtype), wq_ref[...],
                 preferred_element_type=jnp.float32) + bq
    kp = jnp.dot(k_in.astype(mm_dtype), wk_ref[...],
                 preferred_element_type=jnp.float32) + bk
    vp = jnp.dot(v_in.astype(mm_dtype), wv_ref[...],
                 preferred_element_type=jnp.float32) + bv

    # (Bt*L, H*d) -> (Bt, L, H*d) for per-head, batch-batched attention.
    qp = qp.reshape(batch_block, len_q, hd_k)
    kp = kp.reshape(batch_block, len_k, hd_k)
    vp = vp.reshape(batch_block, len_k, hd_v)

    wfc = wfc_ref[...]                                   # (H*d_v, d_model)

    # fc-bias + residual seed the accumulator; per-head contributions are
    # accumulated via static block-row slices of wfc (no head concat).
    y = q_in + bfc                                       # (Bt*Lq, d_model) f32

    # TODO(synk): for large n_head, replace this Python loop with a single
    #             batched dot_general over an explicit head axis.
    for h in range(n_head):
        qh = qp[:, :, h * d_k:(h + 1) * d_k].astype(mm_dtype)   # (Bt, Lq, dk)
        kh = kp[:, :, h * d_k:(h + 1) * d_k].astype(mm_dtype)   # (Bt, Lk, dk)
        vh = vp[:, :, h * d_v:(h + 1) * d_v].astype(mm_dtype)   # (Bt, Lk, dv)

        # s = qh @ kh^T batched over Bt (1/temperature already in wq).
        s = jax.lax.dot_general(qh, kh, (((2,), (2,)), ((0,), (0,))),
                                preferred_element_type=jnp.float32)   # (Bt,Lq,Lk)
        m = jnp.max(s, axis=-1, keepdims=True)
        e = jnp.exp(s - m)
        p = e / jnp.sum(e, axis=-1, keepdims=True)       # exact softmax

        oh = jax.lax.dot_general(p.astype(mm_dtype), vh,
                                 (((2,), (1,)), ((0,), (0,))),
                                 preferred_element_type=jnp.float32)  # (Bt,Lq,dv)

        # Accumulate this head's fc contribution (block-row matmul).
        y = y + jnp.dot(oh.reshape(rows_q, d_v).astype(mm_dtype),
                        wfc[h * d_v:(h + 1) * d_v, :],
                        preferred_element_type=jnp.float32)

    # LayerNorm epilogue (dropout = identity, eval mode).
    mu = jnp.mean(y, axis=-1, keepdims=True)
    var = jnp.mean((y - mu) ** 2, axis=-1, keepdims=True)
    zn = (y - mu) * jax.lax.rsqrt(var + eps)
    out = zn * gamma + beta
    o_ref[...] = out.reshape(batch_block, len_q, d_model).astype(o_ref.dtype)


# ----------------------------------------------------------------------------
# Wrapper: host-side one-time weight prep + single pallas_call
# ----------------------------------------------------------------------------
def multi_head_attention(params, q, k, v, n_head, d_k, d_v, *,
                         mm_dtype=jnp.bfloat16, eps=1e-5, batch_block=None):
    sz_b, len_q, d_model = q.shape
    _, len_k, _ = k.shape
    hd_k = n_head * d_k
    hd_v = n_head * d_v
    if batch_block is None:
        batch_block = sz_b          # fold whole batch (on v7x: use sz_b // 2)
    assert sz_b % batch_block == 0, "sz_b must be divisible by batch_block"
    temperature = float(np.power(d_k, 0.5))

    # Pre-transpose weights to (d_in, d_out); fold 1/temperature into Q proj.
    wq_t = (params["w_qs_w"] / temperature).T.astype(mm_dtype)   # (d_model, H*dk)
    wk_t = params["w_ks_w"].T.astype(mm_dtype)                   # (d_model, H*dk)
    wv_t = params["w_vs_w"].T.astype(mm_dtype)                   # (d_model, H*dv)
    wfc_t = params["fc_w"].T.astype(mm_dtype)                    # (H*dv, d_model)

    # Pack the six tiny vectors into one (8, Dmax) f32 buffer (single VMEM tile).
    d_max = max(hd_k, hd_v, d_model)
    packed = jnp.zeros((8, d_max), jnp.float32)
    packed = packed.at[0, :hd_k].set((params["w_qs_b"] / temperature).astype(jnp.float32))
    packed = packed.at[1, :hd_k].set(params["w_ks_b"].astype(jnp.float32))
    packed = packed.at[2, :hd_v].set(params["w_vs_b"].astype(jnp.float32))
    packed = packed.at[3, :d_model].set(params["fc_b"].astype(jnp.float32))
    packed = packed.at[4, :d_model].set(params["ln_g"].astype(jnp.float32))
    packed = packed.at[5, :d_model].set(params["ln_b"].astype(jnp.float32))

    kern = functools.partial(_mha_kernel, n_head=n_head, d_k=d_k, d_v=d_v,
                             d_model=d_model, len_q=len_q, len_k=len_k,
                             batch_block=batch_block, eps=eps, mm_dtype=mm_dtype)

    return pl.pallas_call(
        kern,
        out_shape=jax.ShapeDtypeStruct((sz_b, len_q, d_model), q.dtype),
        grid_spec=pltpu.PrefetchScalarGridSpec(
            num_scalar_prefetch=0,
            grid=(sz_b // batch_block,),
            in_specs=[
                pl.BlockSpec((batch_block, len_q, d_model), lambda b: (b, 0, 0)),  # q
                pl.BlockSpec((batch_block, len_k, d_model), lambda b: (b, 0, 0)),  # k
                pl.BlockSpec((batch_block, len_k, d_model), lambda b: (b, 0, 0)),  # v
                pl.BlockSpec((d_model, hd_k), lambda b: (0, 0)),                   # wq^T
                pl.BlockSpec((d_model, hd_k), lambda b: (0, 0)),                   # wk^T
                pl.BlockSpec((d_model, hd_v), lambda b: (0, 0)),                   # wv^T
                pl.BlockSpec((hd_v, d_model), lambda b: (0, 0)),                   # wfc^T
                pl.BlockSpec((8, d_max), lambda b: (0, 0)),                        # packed
            ],
            out_specs=pl.BlockSpec((batch_block, len_q, d_model), lambda b: (b, 0, 0)),
        ),
        compiler_params=pltpu.CompilerParams(
            dimension_semantics=("parallel",),
            vmem_limit_bytes=32 * 1024 * 1024),
    )(q, k, v, wq_t, wk_t, wv_t, wfc_t, packed)


# ----------------------------------------------------------------------------
# Pure-JAX reference (mirrors the PyTorch module, eval mode, high precision)
# ----------------------------------------------------------------------------
def reference_mha(params, q, k, v, n_head, d_k, d_v):
    hp = jax.lax.Precision.HIGHEST
    sz_b, len_q, d_model = q.shape
    _, len_k, _ = k.shape
    residual = q
    qp = jnp.einsum("bld,nd->bln", q, params["w_qs_w"], precision=hp) + params["w_qs_b"]
    kp = jnp.einsum("bld,nd->bln", k, params["w_ks_w"], precision=hp) + params["w_ks_b"]
    vp = jnp.einsum("bld,nd->bln", v, params["w_vs_w"], precision=hp) + params["w_vs_b"]
    qh = qp.reshape(sz_b, len_q, n_head, d_k).transpose(2, 0, 1, 3).reshape(-1, len_q, d_k)
    kh = kp.reshape(sz_b, len_k, n_head, d_k).transpose(2, 0, 1, 3).reshape(-1, len_k, d_k)
    vh = vp.reshape(sz_b, len_k, n_head, d_v).transpose(2, 0, 1, 3).reshape(-1, len_k, d_v)
    s = jnp.einsum("bqd,bkd->bqk", qh, kh, precision=hp) / np.power(d_k, 0.5)
    p = jax.nn.softmax(s, axis=2)
    out = jnp.einsum("bqk,bkd->bqd", p, vh, precision=hp)
    out = out.reshape(n_head, sz_b, len_q, d_v).transpose(1, 2, 0, 3).reshape(sz_b, len_q, -1)
    y = jnp.einsum("bln,dn->bld", out, params["fc_w"], precision=hp) + params["fc_b"] + residual
    mu = jnp.mean(y, axis=-1, keepdims=True)
    var = jnp.mean((y - mu) ** 2, axis=-1, keepdims=True)
    return (y - mu) / jnp.sqrt(var + 1e-5) * params["ln_g"] + params["ln_b"]


if __name__ == "__main__":
    # Small shapes consistent with the module
    sz_b, seq_len, d_model = 2, 8, 32
    n_head, d_k, d_v = 2, 16, 16

    key = jax.random.PRNGKey(0)
    ks = jax.random.split(key, 8)

    std_qk = np.sqrt(2.0 / (d_model + d_k))
    std_v = np.sqrt(2.0 / (d_model + d_v))
    xav = np.sqrt(2.0 / (n_head * d_v + d_model))  # xavier_normal_ std for fc

    params = {
        "w_qs_w": (jax.random.normal(ks[0], (n_head * d_k, d_model)) * std_qk).astype(jnp.float32),
        "w_qs_b": jnp.zeros((n_head * d_k,), jnp.float32),
        "w_ks_w": (jax.random.normal(ks[1], (n_head * d_k, d_model)) * std_qk).astype(jnp.float32),
        "w_ks_b": jnp.zeros((n_head * d_k,), jnp.float32),
        "w_vs_w": (jax.random.normal(ks[2], (n_head * d_v, d_model)) * std_v).astype(jnp.float32),
        "w_vs_b": jnp.zeros((n_head * d_v,), jnp.float32),
        "fc_w": (jax.random.normal(ks[3], (d_model, n_head * d_v)) * xav).astype(jnp.float32),
        "fc_b": jnp.zeros((d_model,), jnp.float32),
        "ln_g": jnp.ones((d_model,), jnp.float32),
        "ln_b": jnp.zeros((d_model,), jnp.float32),
    }

    q = jax.random.normal(ks[4], (sz_b, seq_len, d_model), jnp.float32)
    k = jax.random.normal(ks[5], (sz_b, seq_len, d_model), jnp.float32)
    v = jax.random.normal(ks[6], (sz_b, seq_len, d_model), jnp.float32)

    ref = reference_mha(params, q, k, v, n_head, d_k, d_v)

    # f32 MXU operand path: tight parity check against the reference.
    out_f32 = multi_head_attention(params, q, k, v, n_head, d_k, d_v,
                                   mm_dtype=jnp.float32)
    out_f32 = jax.block_until_ready(out_f32)
    np.testing.assert_allclose(np.asarray(out_f32), np.asarray(ref),
                               rtol=2e-3, atol=2e-3)

    # Default path: bf16 MXU operands, f32 accumulation (perf path on all chips).
    out_bf16 = multi_head_attention(params, q, k, v, n_head, d_k, d_v)
    out_bf16 = jax.block_until_ready(out_bf16)
    np.testing.assert_allclose(np.asarray(out_bf16), np.asarray(ref),
                               rtol=8e-2, atol=8e-2)

    print("KERNEL_OK")
</pallas_src>

<mosaic_0001>
module attributes {stable_mosaic.version = 11 : i64} {
  func.func @_mha_kernel(%arg0: i32, %arg1: memref<2x8x32xf32, #tpu.memory_space<vmem>>, %arg2: memref<2x8x32xf32, #tpu.memory_space<vmem>>, %arg3: memref<2x8x32xf32, #tpu.memory_space<vmem>>, %arg4: memref<32x32xf32, #tpu.memory_space<vmem>>, %arg5: memref<32x32xf32, #tpu.memory_space<vmem>>, %arg6: memref<32x32xf32, #tpu.memory_space<vmem>>, %arg7: memref<32x32xf32, #tpu.memory_space<vmem>>, %arg8: memref<8x32xf32, #tpu.memory_space<vmem>>, %arg9: memref<2x8x32xf32, #tpu.memory_space<vmem>>) attributes {dimension_semantics = [#tpu.dimension_semantics<parallel>], iteration_bounds = array<i64: 1>, scalar_prefetch = 0 : i64, scratch_operands = 0 : i64, tpu.core_type = #tpu.core_type<tc>, window_params = [{transform_indices = @transform_0, window_bounds = array<i64: 2, 8, 32>}, {transform_indices = @transform_1, window_bounds = array<i64: 2, 8, 32>}, {transform_indices = @transform_2, window_bounds = array<i64: 2, 8, 32>}, {pipeline_mode = #tpu.pipeline_mode<synchronous>, transform_indices = @transform_3, window_bounds = array<i64: 32, 32>}, {pipeline_mode = #tpu.pipeline_mode<synchronous>, transform_indices = @transform_4, window_bounds = array<i64: 32, 32>}, {pipeline_mode = #tpu.pipeline_mode<synchronous>, transform_indices = @transform_5, window_bounds = array<i64: 32, 32>}, {pipeline_mode = #tpu.pipeline_mode<synchronous>, transform_indices = @transform_6, window_bounds = array<i64: 32, 32>}, {pipeline_mode = #tpu.pipeline_mode<synchronous>, transform_indices = @transform_7, window_bounds = array<i64: 8, 32>}, {transform_indices = @transform_8, window_bounds = array<i64: 2, 8, 32>}]} {
    %c0 = arith.constant 0 : index
    %c0_0 = arith.constant 0 : index
    %0 = vector.load %arg8[%c0, %c0_0] : memref<8x32xf32, #tpu.memory_space<vmem>>, vector<8x32xf32>
    %1 = vector.extract_strided_slice %0 {offsets = [0, 0], sizes = [1, 32], strides = [1, 1]} : vector<8x32xf32> to vector<1x32xf32>
    %2 = vector.extract_strided_slice %0 {offsets = [1, 0], sizes = [1, 32], strides = [1, 1]} : vector<8x32xf32> to vector<1x32xf32>
    %3 = vector.extract_strided_slice %0 {offsets = [2, 0], sizes = [1, 32], strides = [1, 1]} : vector<8x32xf32> to vector<1x32xf32>
    %4 = vector.extract_strided_slice %0 {offsets = [3, 0], sizes = [1, 32], strides = [1, 1]} : vector<8x32xf32> to vector<1x32xf32>
    %5 = vector.extract_strided_slice %0 {offsets = [4, 0], sizes = [1, 32], strides = [1, 1]} : vector<8x32xf32> to vector<1x32xf32>
    %6 = vector.extract_strided_slice %0 {offsets = [5, 0], sizes = [1, 32], strides = [1, 1]} : vector<8x32xf32> to vector<1x32xf32>
    %c0_1 = arith.constant 0 : index
    %c0_2 = arith.constant 0 : index
    %c0_3 = arith.constant 0 : index
    %7 = vector.load %arg1[%c0_1, %c0_2, %c0_3] : memref<2x8x32xf32, #tpu.memory_space<vmem>>, vector<2x8x32xf32>
    %8 = vector.shape_cast %7 : vector<2x8x32xf32> to vector<16x32xf32>
    %c0_4 = arith.constant 0 : index
    %c0_5 = arith.constant 0 : index
    %c0_6 = arith.constant 0 : index
    %9 = vector.load %arg2[%c0_4, %c0_5, %c0_6] : memref<2x8x32xf32, #tpu.memory_space<vmem>>, vector<2x8x32xf32>
    %10 = vector.shape_cast %9 : vector<2x8x32xf32> to vector<16x32xf32>
    %c0_7 = arith.constant 0 : index
    %c0_8 = arith.constant 0 : index
    %c0_9 = arith.constant 0 : index
    %11 = vector.load %arg3[%c0_7, %c0_8, %c0_9] : memref<2x8x32xf32, #tpu.memory_space<vmem>>, vector<2x8x32xf32>
    %12 = vector.shape_cast %11 : vector<2x8x32xf32> to vector<16x32xf32>
    %c0_10 = arith.constant 0 : index
    %c0_11 = arith.constant 0 : index
    %13 = vector.load %arg4[%c0_10, %c0_11] : memref<32x32xf32, #tpu.memory_space<vmem>>, vector<32x32xf32>
    %cst = arith.constant dense<0.000000e+00> : vector<16x32xf32>
    %14 = tpu.matmul %8, %13, %cst {dimension_numbers = #tpu.dot_dimension_numbers<[1], [0], [0], [1], [0, 0, 1, 1], [], []>} : vector<16x32xf32>, vector<32x32xf32>, vector<16x32xf32> -> vector<16x32xf32>
    %15 = vector.broadcast %1 : vector<1x32xf32> to vector<16x32xf32>
    %16 = arith.addf %14, %15 : vector<16x32xf32>
    %c0_12 = arith.constant 0 : index
    %c0_13 = arith.constant 0 : index
    %17 = vector.load %arg5[%c0_12, %c0_13] : memref<32x32xf32, #tpu.memory_space<vmem>>, vector<32x32xf32>
    %cst_14 = arith.constant dense<0.000000e+00> : vector<16x32xf32>
    %18 = tpu.matmul %10, %17, %cst_14 {dimension_numbers = #tpu.dot_dimension_numbers<[1], [0], [0], [1], [0, 0, 1, 1], [], []>} : vector<16x32xf32>, vector<32x32xf32>, vector<16x32xf32> -> vector<16x32xf32>
    %19 = vector.broadcast %2 : vector<1x32xf32> to vector<16x32xf32>
    %20 = arith.addf %18, %19 : vector<16x32xf32>
    %c0_15 = arith.constant 0 : index
    %c0_16 = arith.constant 0 : index
    %21 = vector.load %arg6[%c0_15, %c0_16] : memref<32x32xf32, #tpu.memory_space<vmem>>, vector<32x32xf32>
    %cst_17 = arith.constant dense<0.000000e+00> : vector<16x32xf32>
    %22 = tpu.matmul %12, %21, %cst_17 {dimension_numbers = #tpu.dot_dimension_numbers<[1], [0], [0], [1], [0, 0, 1, 1], [], []>} : vector<16x32xf32>, vector<32x32xf32>, vector<16x32xf32> -> vector<16x32xf32>
    %23 = vector.broadcast %3 : vector<1x32xf32> to vector<16x32xf32>
    %24 = arith.addf %22, %23 : vector<16x32xf32>
    %25 = vector.shape_cast %16 : vector<16x32xf32> to vector<2x8x32xf32>
    %26 = vector.shape_cast %20 : vector<16x32xf32> to vector<2x8x32xf32>
    %27 = vector.shape_cast %24 : vector<16x32xf32> to vector<2x8x32xf32>
    %c0_18 = arith.constant 0 : index
    %c0_19 = arith.constant 0 : index
    %28 = vector.load %arg7[%c0_18, %c0_19] : memref<32x32xf32, #tpu.memory_space<vmem>>, vector<32x32xf32>
    %29 = vector.broadcast %4 : vector<1x32xf32> to vector<16x32xf32>
    %30 = arith.addf %8, %29 : vector<16x32xf32>
    %31 = vector.extract_strided_slice %25 {offsets = [0, 0, 0], sizes = [2, 8, 16], strides = [1, 1, 1]} : vector<2x8x32xf32> to vector<2x8x16xf32>
    %32 = vector.extract_strided_slice %26 {offsets = [0, 0, 0], sizes = [2, 8, 16], strides = [1, 1, 1]} : vector<2x8x32xf32> to vector<2x8x16xf32>
    %33 = vector.extract_strided_slice %27 {offsets = [0, 0, 0], sizes = [2, 8, 16], strides = [1, 1, 1]} : vector<2x8x32xf32> to vector<2x8x16xf32>
    %cst_20 = arith.constant dense<0.000000e+00> : vector<2x8x8xf32>
    %34 = tpu.matmul %31, %32, %cst_20 {dimension_numbers = #tpu.dot_dimension_numbers<[2], [2], [1], [1], [0, 0, 0, 1, 1, 1], [0], [0]>} : vector<2x8x16xf32>, vector<2x8x16xf32>, vector<2x8x8xf32> -> vector<2x8x8xf32>
    %cst_21 = arith.constant dense<0xFF800000> : vector<2x8xf32>
    %35 = vector.multi_reduction <maximumf>, %34, %cst_21 [2] : vector<2x8x8xf32> to vector<2x8xf32>
    %36 = vector.shape_cast %35 : vector<2x8xf32> to vector<2x8x1xf32>
    %37 = vector.broadcast %36 : vector<2x8x1xf32> to vector<2x8x8xf32>
    %38 = arith.subf %34, %37 : vector<2x8x8xf32>
    %39 = math.exp %38 : vector<2x8x8xf32>
    %cst_22 = arith.constant dense<0.000000e+00> : vector<2x8xf32>
    %40 = vector.multi_reduction <add>, %39, %cst_22 [2] : vector<2x8x8xf32> to vector<2x8xf32>
    %41 = vector.shape_cast %40 : vector<2x8xf32> to vector<2x8x1xf32>
    %42 = vector.broadcast %41 : vector<2x8x1xf32> to vector<2x8x8xf32>
    %43 = arith.divf %39, %42 : vector<2x8x8xf32>
    %cst_23 = arith.constant dense<0.000000e+00> : vector<2x8x16xf32>
    %44 = tpu.matmul %43, %33, %cst_23 {dimension_numbers = #tpu.dot_dimension_numbers<[2], [1], [1], [2], [0, 0, 0, 1, 1, 2], [0], [0]>} : vector<2x8x8xf32>, vector<2x8x16xf32>, vector<2x8x16xf32> -> vector<2x8x16xf32>
    %45 = vector.shape_cast %44 : vector<2x8x16xf32> to vector<16x16xf32>
    %46 = vector.extract_strided_slice %28 {offsets = [0, 0], sizes = [16, 32], strides = [1, 1]} : vector<32x32xf32> to vector<16x32xf32>
    %cst_24 = arith.constant dense<0.000000e+00> : vector<16x32xf32>
    %47 = tpu.matmul %45, %46, %cst_24 {dimension_numbers = #tpu.dot_dimension_numbers<[1], [0], [0], [1], [0, 0, 1, 1], [], []>} : vector<16x16xf32>, vector<16x32xf32>, vector<16x32xf32> -> vector<16x32xf32>
    %48 = arith.addf %30, %47 : vector<16x32xf32>
    %49 = vector.extract_strided_slice %25 {offsets = [0, 0, 16], sizes = [2, 8, 16], strides = [1, 1, 1]} : vector<2x8x32xf32> to vector<2x8x16xf32>
    %50 = vector.extract_strided_slice %26 {offsets = [0, 0, 16], sizes = [2, 8, 16], strides = [1, 1, 1]} : vector<2x8x32xf32> to vector<2x8x16xf32>
    %51 = vector.extract_strided_slice %27 {offsets = [0, 0, 16], sizes = [2, 8, 16], strides = [1, 1, 1]} : vector<2x8x32xf32> to vector<2x8x16xf32>
    %cst_25 = arith.constant dense<0.000000e+00> : vector<2x8x8xf32>
    %52 = tpu.matmul %49, %50, %cst_25 {dimension_numbers = #tpu.dot_dimension_numbers<[2], [2], [1], [1], [0, 0, 0, 1, 1, 1], [0], [0]>} : vector<2x8x16xf32>, vector<2x8x16xf32>, vector<2x8x8xf32> -> vector<2x8x8xf32>
    %cst_26 = arith.constant dense<0xFF800000> : vector<2x8xf32>
    %53 = vector.multi_reduction <maximumf>, %52, %cst_26 [2] : vector<2x8x8xf32> to vector<2x8xf32>
    %54 = vector.shape_cast %53 : vector<2x8xf32> to vector<2x8x1xf32>
    %55 = vector.broadcast %54 : vector<2x8x1xf32> to vector<2x8x8xf32>
    %56 = arith.subf %52, %55 : vector<2x8x8xf32>
    %57 = math.exp %56 : vector<2x8x8xf32>
    %cst_27 = arith.constant dense<0.000000e+00> : vector<2x8xf32>
    %58 = vector.multi_reduction <add>, %57, %cst_27 [2] : vector<2x8x8xf32> to vector<2x8xf32>
    %59 = vector.shape_cast %58 : vector<2x8xf32> to vector<2x8x1xf32>
    %60 = vector.broadcast %59 : vector<2x8x1xf32> to vector<2x8x8xf32>
    %61 = arith.divf %57, %60 : vector<2x8x8xf32>
    %cst_28 = arith.constant dense<0.000000e+00> : vector<2x8x16xf32>
    %62 = tpu.matmul %61, %51, %cst_28 {dimension_numbers = #tpu.dot_dimension_numbers<[2], [1], [1], [2], [0, 0, 0, 1, 1, 2], [0], [0]>} : vector<2x8x8xf32>, vector<2x8x16xf32>, vector<2x8x16xf32> -> vector<2x8x16xf32>
    %63 = vector.shape_cast %62 : vector<2x8x16xf32> to vector<16x16xf32>
    %64 = vector.extract_strided_slice %28 {offsets = [16, 0], sizes = [16, 32], strides = [1, 1]} : vector<32x32xf32> to vector<16x32xf32>
    %cst_29 = arith.constant dense<0.000000e+00> : vector<16x32xf32>
    %65 = tpu.matmul %63, %64, %cst_29 {dimension_numbers = #tpu.dot_dimension_numbers<[1], [0], [0], [1], [0, 0, 1, 1], [], []>} : vector<16x16xf32>, vector<16x32xf32>, vector<16x32xf32> -> vector<16x32xf32>
    %66 = arith.addf %48, %65 : vector<16x32xf32>
    %cst_30 = arith.constant dense<0.000000e+00> : vector<16xf32>
    %67 = vector.multi_reduction <add>, %66, %cst_30 [1] : vector<16x32xf32> to vector<16xf32>
    %68 = vector.shape_cast %67 : vector<16xf32> to vector<16x1xf32>
    %cst_31 = arith.constant 3.200000e+01 : f32
    %69 = vector.broadcast %cst_31 : f32 to vector<16x1xf32>
    %70 = arith.divf %68, %69 : vector<16x1xf32>
    %71 = vector.broadcast %70 : vector<16x1xf32> to vector<16x32xf32>
    %72 = arith.subf %66, %71 : vector<16x32xf32>
    %73 = arith.mulf %72, %72 : vector<16x32xf32>
    %cst_32 = arith.constant dense<0.000000e+00> : vector<16xf32>
    %74 = vector.multi_reduction <add>, %73, %cst_32 [1] : vector<16x32xf32> to vector<16xf32>
    %75 = vector.shape_cast %74 : vector<16xf32> to vector<16x1xf32>
    %cst_33 = arith.constant 3.200000e+01 : f32
    %76 = vector.broadcast %cst_33 : f32 to vector<16x1xf32>
    %77 = arith.divf %75, %76 : vector<16x1xf32>
    %78 = vector.broadcast %70 : vector<16x1xf32> to vector<16x32xf32>
    %79 = arith.subf %66, %78 : vector<16x32xf32>
    %cst_34 = arith.constant 9.99999974E-6 : f32
    %80 = vector.broadcast %cst_34 : f32 to vector<16x1xf32>
    %81 = arith.addf %77, %80 : vector<16x1xf32>
    %82 = math.rsqrt %81 : vector<16x1xf32>
    %83 = vector.broadcast %82 : vector<16x1xf32> to vector<16x32xf32>
    %84 = arith.mulf %79, %83 : vector<16x32xf32>
    %85 = vector.broadcast %5 : vector<1x32xf32> to vector<16x32xf32>
    %86 = arith.mulf %84, %85 : vector<16x32xf32>
    %87 = vector.broadcast %6 : vector<1x32xf32> to vector<16x32xf32>
    %88 = arith.addf %86, %87 : vector<16x32xf32>
    %89 = vector.shape_cast %88 : vector<16x32xf32> to vector<2x8x32xf32>
    %c0_35 = arith.constant 0 : index
    %c0_36 = arith.constant 0 : index
    %c0_37 = arith.constant 0 : index
    %90 = vector.load %arg9[%c0_35, %c0_36, %c0_37] : memref<2x8x32xf32, #tpu.memory_space<vmem>>, vector<2x8x32xf32>
    tpu.vector_store %arg9[%c0_35, %c0_36, %c0_37], %89 {strides = array<i32>} : memref<2x8x32xf32, #tpu.memory_space<vmem>>, vector<2x8x32xf32>,
    return
  }
  func.func @transform_0(%arg0: i32) -> (i32, i32, i32) {
    %c0_i32 = arith.constant 0 : i32
    %c0_i32_0 = arith.constant 0 : i32
    %c0_i32_1 = arith.constant 0 : i32
    return %arg0, %c0_i32, %c0_i32_0 : i32, i32, i32
  }
  func.func @transform_1(%arg0: i32) -> (i32, i32, i32) {
    %c0_i32 = arith.constant 0 : i32
    %c0_i32_0 = arith.constant 0 : i32
    %c0_i32_1 = arith.constant 0 : i32
    return %arg0, %c0_i32, %c0_i32_0 : i32, i32, i32
  }
  func.func @transform_2(%arg0: i32) -> (i32, i32, i32) {
    %c0_i32 = arith.constant 0 : i32
    %c0_i32_0 = arith.constant 0 : i32
    %c0_i32_1 = arith.constant 0 : i32
    return %arg0, %c0_i32, %c0_i32_0 : i32, i32, i32
  }
  func.func @transform_3(%arg0: i32) -> (i32, i32) {
    %c0_i32 = arith.constant 0 : i32
    %c0_i32_0 = arith.constant 0 : i32
    %c0_i32_1 = arith.constant 0 : i32
    return %c0_i32, %c0_i32_0 : i32, i32
  }
  func.func @transform_4(%arg0: i32) -> (i32, i32) {
    %c0_i32 = arith.constant 0 : i32
    %c0_i32_0 = arith.constant 0 : i32
    %c0_i32_1 = arith.constant 0 : i32
    return %c0_i32, %c0_i32_0 : i32, i32
  }
  func.func @transform_5(%arg0: i32) -> (i32, i32) {
    %c0_i32 = arith.constant 0 : i32
    %c0_i32_0 = arith.constant 0 : i32
    %c0_i32_1 = arith.constant 0 : i32
    return %c0_i32, %c0_i32_0 : i32, i32
  }
  func.func @transform_6(%arg0: i32) -> (i32, i32) {
    %c0_i32 = arith.constant 0 : i32
    %c0_i32_0 = arith.constant 0 : i32
    %c0_i32_1 = arith.constant 0 : i32
    return %c0_i32, %c0_i32_0 : i32, i32
  }
  func.func @transform_7(%arg0: i32) -> (i32, i32) {
    %c0_i32 = arith.constant 0 : i32
    %c0_i32_0 = arith.constant 0 : i32
    %c0_i32_1 = arith.constant 0 : i32
    return %c0_i32, %c0_i32_0 : i32, i32
  }
  func.func @transform_8(%arg0: i32) -> (i32, i32, i32) {
    %c0_i32 = arith.constant 0 : i32
    %c0_i32_0 = arith.constant 0 : i32
    %c0_i32_1 = arith.constant 0 : i32
    return %arg0, %c0_i32, %c0_i32_0 : i32, i32, i32
  }
}

</mosaic_0001>

<bundles_post_ra>
// kernel: tpu_custom_call.1
= control target key start
LH: loop header
LB: loop body
LE: loop exit
PB: predicated region body
PF: predicated region fallthrough
CT: control target
= control target key end

     0   :  { %13 = vsyncpa [#allocation3], 0  ;;  %s1191_s0 = inlined_call_operand.hbm [shape: f32[2,8,32], index: 0, kind: input, shape index: {}]   ;;  %s1192_s1 = inlined_call_operand.hbm [shape: f32[2,8,32], index: 1, kind: input, shape index: {}]   ;;  %s1193_s2 = inlined_call_operand.hbm [shape: f32[2,8,32], index: 2, kind: input, shape index: {}]   ;;  %s1194_s3 = inlined_call_operand.hbm [shape: f32[32,32], index: 3, kind: input, shape index: {}]   ;;  %s1195_s4 = inlined_call_operand.hbm [shape: f32[32,32], index: 4, kind: input, shape index: {}]   ;;  %s1196_s5 = inlined_call_operand.hbm [shape: f32[32,32], index: 5, kind: input, shape index: {}]   ;;  %s1197_s6 = inlined_call_operand.hbm [shape: f32[32,32], index: 6, kind: input, shape index: {}]   ;;  %s1198_s7 = inlined_call_operand.hbm [shape: f32[8,32], index: 7, kind: input, shape index: {}]   ;;  %s1199_s8 = inlined_call_operand.hbm [shape: f32[2,8,32], index: 8, kind: output, shape index: {}]  }
   0x1   :  { %14 = vsyncpa [#allocation6], 0 }
   0x2   :  { %15 = vsyncpa [#allocation9], 0 }
   0x3   :  { %16 = vsyncpa [#allocation12], 0 }
   0x4   :  { %17 = vsyncpa [#allocation15], 0 }
   0x5   :  { %18 = vsyncpa [#allocation4], 0  ;;  %s36_s29 = sshll.u32 %s1192_s1, 4  ;;  %s1010_s30 = smov [#allocation5]   ;;  %s37_s29 = int_to_ptr.hbm [resolvable:$true] %s36_s29 }
   0x6   :  { %s38_s9 = sshll.u32 %s1010_s30, 4  ;;  %s62_s12 = sshll.u32 %s1194_s3, 4  ;;  %s39_s9 = int_to_ptr.vmem [resolvable:$true] %s38_s9  ;;  %s63_s12 = int_to_ptr.hbm [resolvable:$true] %s62_s12 }
   0x7   :  { %s1011_s13 = smov 128   ;;  %s1012_s14 = smov 8  }
   0x8   :  { %44 = dma.hbm_to_vmem [thread:$0]  %s37_s29, 256, %s39_s9, [#allocation6], %s1011_s13, %s1011_s13, %s1012_s14  }
   0x9   :  { %s1013_s15 = smov [#allocation8]   ;;  %s88_s1 = sshll.u32 %s1196_s5, 4  ;;  %s89_s1 = int_to_ptr.hbm [resolvable:$true] %s88_s1 }
   0xa   :  { %s64_s16 = sshll.u32 %s1013_s15, 4  ;;  %s23_s20 = sshll.u32 %s1191_s0, 4  ;;  %s65_s16 = int_to_ptr.vmem [resolvable:$true] %s64_s16  ;;  %s24_s20 = int_to_ptr.hbm [resolvable:$true] %s23_s20 }
   0xb   :  { %70 = dma.hbm_to_vmem [thread:$0]  %s63_s12, 512, %s65_s16, [#allocation9], %s1011_s13, %s1011_s13, %s1012_s14  }
   0xc   :  { %s1014_s21 = smov [#allocation11]   ;;  %s1015_s23 = smov [#allocation2]  }
   0xd   :  { %s90_s22 = sshll.u32 %s1014_s21, 4  ;;  %s25_s5 = sshll.u32 %s1015_s23, 4  ;;  %s91_s22 = int_to_ptr.vmem [resolvable:$true] %s90_s22  ;;  %s26_s5 = int_to_ptr.vmem [resolvable:$true] %s25_s5 }
   0xe   :  { %96 = dma.hbm_to_vmem [thread:$0]  %s89_s1, 512, %s91_s22, [#allocation12], %s1011_s13, %s1011_s13, %s1012_s14  }
   0xf   :  { %s49_s26 = sshll.u32 %s1193_s2, 4  ;;  %s75_s28 = sshll.u32 %s1195_s4, 4  ;;  %s50_s26 = int_to_ptr.hbm [resolvable:$true] %s49_s26  ;;  %s76_s28 = int_to_ptr.hbm [resolvable:$true] %s75_s28 }
  0x10   :  { %31 = dma.hbm_to_vmem [thread:$0]  %s24_s20, 256, %s26_s5, [#allocation3], %s1011_s13, %s1011_s13, %s1012_s14  }
  0x11   :  { %s1016_s29 = smov [#allocation7]   ;;  %s1017_s9 = smov [#allocation10]  }
  0x12   :  { %s51_s30 = sshll.u32 %s1016_s29, 4  ;;  %s77_s2 = sshll.u32 %s1017_s9, 4  ;;  %s52_s30 = int_to_ptr.vmem [resolvable:$true] %s51_s30  ;;  %s78_s2 = int_to_ptr.vmem [resolvable:$true] %s77_s2 }
  0x13   :  { %57 = dma.hbm_to_vmem [thread:$0]  %s50_s26, 256, %s52_s30, [#allocation6], %s1011_s13, %s1011_s13, %s1012_s14  }
  0x14   :  { %s101_s12 = sshll.u32 %s1197_s6, 4  ;;  %s115_s16 = sshll.u32 %s1198_s7, 4  ;;  %s102_s12 = int_to_ptr.hbm [resolvable:$true] %s101_s12  ;;  %s116_s16 = int_to_ptr.hbm [resolvable:$true] %s115_s16 }
  0x15   :  { %83 = dma.hbm_to_vmem [thread:$0]  %s76_s28, 512, %s78_s2, [#allocation9], %s1011_s13, %s1011_s13, %s1012_s14  }
  0x16   :  { %s1018_s17 = smov [#allocation13]   ;;  %s1019_s1 = smov [#allocation14]  }
  0x17   :  { %s103_s18 = sshll.u32 %s1018_s17, 4  ;;  %s117_s6 = sshll.u32 %s1019_s1, 4  ;;  %s104_s18 = int_to_ptr.vmem [resolvable:$true] %s103_s18  ;;  %s118_s6 = int_to_ptr.vmem [resolvable:$true] %s117_s6 }
  0x18   :  { %109 = dma.hbm_to_vmem [thread:$0]  %s102_s12, 512, %s104_s18, [#allocation12], %s1011_s13, %s1011_s13, %s1012_s14  }
  0x19   :  { %120 = dma.hbm_to_vmem [thread:$0]  %s116_s16, 128, %s118_s6, [#allocation15]  }
  0x1a   :  { %998 = dma.done.wait [#allocation3], 256  }
  0x1b   :  { %999 = vsyncadd [#allocation3], 4294967040 }
  0x1c   :  { %1000 = dma.done.wait [#allocation6], 512  }
  0x1d   :  { %1001 = vsyncadd [#allocation6], 4294966784 }
  0x1e   :  { %1002 = dma.done.wait [#allocation9], 1024  }
  0x1f   :  { %1003 = vsyncadd [#allocation9], 4294966272 }
  0x20   :  { %1004 = dma.done.wait [#allocation12], 1024  }
  0x21   :  { %1005 = vsyncadd [#allocation12], 4294966272 }
  0x22   :  { %1006 = dma.done.wait [#allocation15], 128  }
  0x23   :  { %1007 = vsyncadd [#allocation15], 4294967168  ;;  %v198_v0 = vld [vmem:[#allocation10 + $0x18] sm:$0xff]  ;;  %v197_v1 = vld [vmem:[#allocation10 + $0x10] sm:$0xff]  ;;  %vm165_vm0 = vcmask 261120   ;;  %vm270_vm1 = vcmask 130048  }
  0x24   :  { %v163_v2 = vld [vmem:[#allocation8 + $0x18] sm:$0xff]  ;;  %218 = vmatpush.msra.mxu1 %v198_v0  ;;  %v162_v3 = vld [vmem:[#allocation8 + $0x10] sm:$0xff]  ;;  %v196_v4 = vld [vmem:[#allocation10 + $0x8] sm:$0xff]  ;;  %s1020_s7 = smov 112   ;;  %vm323_vm2 = vcmask 64512   ;;  %s1022_s3 = smov [#allocation16]  }
  0x25   :  { %184 = vmatpush.msra.mxu0 %v163_v2  ;;  %v161_v5 = vld [vmem:[#allocation8 + $0x8] sm:$0xff]  ;;  %v195_v6 = vld [vmem:[#allocation10] sm:$0xff]  ;;  %v1113_v9 = vld [vmem:[#allocation2] sm:$0xff]  ;;  %s701_s19 = sshll.u32 %s1022_s3, 4  ;;  %s703_s22 = sshll.u32 %s1199_s8, 4  ;;  %s702_s19 = int_to_ptr.vmem [resolvable:$true] %s701_s19  ;;  %s704_s22 = int_to_ptr.hbm [resolvable:$true] %s703_s22 }
  0x26   :  { %219 = vmatpush.msra.mxu1 %v197_v1  ;;  %v160_v7 = vld [vmem:[#allocation8] sm:$0xff]  ;;  %v1118_v10 = vld [vmem:[#allocation2 + $0x8] sm:$0xff]  ;;  %v157_v11 = vld [vmem:[#allocation5 + $0x8] sm:$0xff] }
  0x27   :  { %185 = vmatpush.msra.mxu0 %v162_v3  ;;  %v156_v8 = vld [vmem:[#allocation5] sm:$0xff]  ;;  %v232_v12 = vld [vmem:[#allocation11 + $0x18] sm:$0xff]  ;;  %v231_v13 = vld [vmem:[#allocation11 + $0x10] sm:$0xff] }
  0x28   :  { %220 = vmatpush.msra.mxu1 %v196_v4  ;;  %252 = vmatpush.msra.mxu2 %v232_v12  ;;  %v230_v14 = vld [vmem:[#allocation11 + $0x8] sm:$0xff]  ;;  %v1123_v15 = vld [vmem:[#allocation14] sm:$0xff]  ;;  %v158_v23 = vld [vmem:[#allocation7] sm:$0xff] }
  0x29   :  { %186 = vmatpush.msra.mxu0 %v161_v5  ;;  %v199_v16 = vperm.slane %v1123_v15, 1  ;;  %v164_v17 = vperm.slane %v1123_v15, 0  ;;  %v229_v22 = vld [vmem:[#allocation11] sm:$0xff]  ;;  %v159_v24 = vld [vmem:[#allocation7 + $0x8] sm:$0xff]  ;;  %v233_v33 = vperm.slane %v1123_v15, 2 }
  0x2a   :  { %221 = vmatpush.msra.mxu1 %v195_v6  ;;  %253 = vmatpush.msra.mxu2 %v231_v13 }
  0x2b   :  { %187 = vmatpush.msra.mxu0 %v160_v7  ;;  %722 = vmatmul.msk.f32.vlgmr.msra.gmra.mxu1 %vm165_vm0, %v156_v8  ;;  %v264_v8 = vld [vmem:[#allocation13 + $0x8] sm:$0xff] }
  0x2c   :  { %720 = vmatmul.msk.f32.vlgmr.msra.gmra.mxu0 %vm165_vm0, %v1113_v9  ;;  %254 = vmatpush.msra.mxu2 %v230_v14 }
  0x2d   :  { %438 = vmatpush.msrb.mxu1 %v264_v8 }
  0x2e   :  { %255 = vmatpush.msra.mxu2 %v229_v22 }
  0x2f   :  { %724 = vmatmul.msk.f32.vlgmr.msra.gmra.mxu2 %vm165_vm0, %v158_v23 }
  0x33   :  { %723 = vmatmul.msk.f32.gmra.mxu1 %vm165_vm0, %v157_v11  ;;  %v263_v11 = vld [vmem:[#allocation13] sm:$0xff] }
  0x34   :  { %721 = vmatmul.msk.f32.gmra.mxu0 %vm165_vm0, %v1118_v10  ;;  %439 = vmatpush.msrb.mxu1 %v263_v11 }
  0x37   :  { %725 = vmatmul.msk.f32.gmra.mxu2 %vm165_vm0, %v159_v24 }
  0xa8   :  { %v223_v18 = vpop.f32.mrf.mxu1 }
  0xa9   :  { %v189_v19 = vpop.f32.mrf.mxu0  ;;  %v224_v20 = vadd.f32 %v223_v18, %v199_v16 }
  0xaa   :  { %v190_v21 = vadd.f32 %v189_v19, %v164_v17 }
  0xab   :  { %451 = vrot.lane.b32.xlu1 %v224_v20, %s1020_s7  ;;  %726 = vmatpush.xpose.msk.msrb.mxu0 %vm270_vm1, %v224_v20 }
  0xac   :  { %449 = vrot.lane.b32.xlu2 %v190_v21, %s1020_s7 }
  0xae   :  { %727 = vmatmul.msk.f32.vlgmr.msrb.gmra.mxu0 %vm270_vm1, %v190_v21 }
  0xb0   :  { %v226_v25 = vpop.f32.mrf.mxu1 }
  0xb1   :  { %v192_v26 = vpop.f32.mrf.mxu0  ;;  %v227_v27 = vadd.f32 %v226_v25, %v199_v16 }
  0xb2   :  { %v193_v28 = vadd.f32 %v192_v26, %v164_v17  ;;  %v257_v34 = vpop.f32.mrf.mxu2 }
  0xb3   :  { %728 = vmatpush.xpose.msk.msra.mxu3 %vm270_vm1, %v227_v27  ;;  %479 = vrot.lane.b32.xlu1 %v227_v27, %s1020_s7  ;;  %v1141_v35 = vadd.f32 %v257_v34, %v233_v33 }
  0xb4   :  { %477 = vrot.lane.b32.xlu2 %v193_v28, %s1020_s7 }
  0xb6   :  { %729 = vmatmul.msk.f32.vlgmr.msra.gmra.mxu3 %vm270_vm1, %v193_v28 }
  0xb7   :  { %390 = vmatpush.msrb.mxu3 %v1141_v35 }
  0xba   :  { %v260_v36 = vpop.f32.mrf.mxu2 }
  0xbb   :  { %v1144_v37 = vadd.f32 %v260_v36, %v233_v33  ;;  %v266_v36 = vld [vmem:[#allocation13 + $0x18] sm:$0xff] }
  0xbd   :  { %v755_v38 = vpack.i.bf16 %v1144_v37, %v1141_v35  ;;  %413 = vmatpush.msra.mxu0 %v1144_v37 }
 0x106   :  { %v450_v30 = vpop.permute.xlu2 %449 }
 0x10e   :  { %v478_v6 = vpop.permute.xlu2 %477 }
 0x11d   :  { %v452_v29 = vpop.permute.xlu1 %451 }
 0x11e   :  { %734 = vmatpush.xpose.msk.msrb.mxu2 %vm270_vm1, %v452_v29 }
 0x121   :  { %735 = vmatmul.msk.f32.vlgmr.msrb.gmra.mxu2 %vm270_vm1, %v450_v30 }
 0x125   :  { %v480_v39 = vpop.permute.xlu1 %479 }
 0x126   :  { %736 = vmatpush.xpose.msk.msra.mxu3 %vm270_vm1, %v480_v39 }
 0x12b   :  { %v294_v31 = vpop.f32.mrf.mxu0 }
 0x12c   :  { %v324_v32 = vsel %vm323_vm2, %v294_v31, -inf }
 0x12d   :  { %325 = vmax.xlane.f32.xlu0 %v324_v32 }
 0x139   :  { %v320_v47 = vpop.f32.mrf.mxu3 }
 0x13a   :  { %v327_v48 = vsel %vm323_vm2, %v320_v47, -inf }
 0x1a0   :  { %v326_v40 = vpop.xlane.xlu0 %325 }
 0x1a1   :  { %v330_v41 = vsub.f32 %v294_v31, %v326_v40 }
 0x1a3   :  { %v332_v42 = vmul.f32 1.442695, %v330_v41 }
 0x1a4   :  { %v474_v43 = vpop.f32.mrf.mxu2 }
 0x1a5   :  { %760 = vpow2.f32 %v332_v42  ;;  %v505_v44 = vsel %vm323_vm2, %v474_v43, -inf }
 0x1a6   :  { %506 = vmax.xlane.f32.xlu1 %v505_v44 }
 0x1ab   :  { %v761_v45 = vpop.eup %760 }
 0x1ac   :  { %v336_v46 = vsel %vm323_vm2, %v761_v45, 0.0 }
 0x1ad   :  { %337 = vadd.xlane.f32.xlu0 %v336_v46 }
 0x1b5   :  { %328 = vmax.xlane.f32.xlu0 %v327_v48 }
 0x219   :  { %v507_v51 = vpop.xlane.xlu1 %506 }
 0x21a   :  { %v511_v56 = vsub.f32 %v474_v43, %v507_v51 }
 0x21c   :  { %v513_v62 = vmul.f32 1.442695, %v511_v56 }
 0x220   :  { %v338_v49 = vpop.xlane.xlu0 %337 }
 0x221   :  { %762 = vrcp.f32 %v338_v49  ;;  %v353_v57 = vand.u32 2147483648, %v338_v49  ;;  %v351_v60 = vand.u32 2147483647, %v338_v49  ;;  %vm347_vm4 = vweird.f32 %v338_v49 }
 0x223   :  { %v354_v63 = vor.u32 1.1754944e-38, %v353_v57  ;;  %vm352_vm6 = vcmp.eq.f32.partialorder %v351_v60, 8.507059e+37 }
 0x227   :  { %v763_v50 = vpop.eup %762 }
 0x228   :  { %v343_v52 = vmul.f32 %v763_v50, %v338_v49  ;;  %v329_v53 = vpop.xlane.xlu0 %328  ;;  %vm348_vm3 = vweird.f32 %v763_v50 }
 0x229   :  { %v331_v54 = vsub.f32 %v320_v47, %v329_v53  ;;  %vm349_vm5 = vmor %vm347_vm4, %vm348_vm3 }
 0x22a   :  { %v344_v55 = vsub.f32 1.0, %v343_v52 }
 0x22b   :  { %v334_v58 = vmul.f32 1.442695, %v331_v54 }
 0x22c   :  { %v345_v59 = vmul.f32 %v763_v50, %v344_v55 }
 0x22d   :  { %764 = vpow2.f32 %v334_v58 }
 0x22e   :  { %v346_v61 = vadd.f32 %v763_v50, %v345_v59  ;;  %766 = vpow2.f32 %v513_v62  ;;  %v265_v62 = vld [vmem:[#allocation13 + $0x10] sm:$0xff] }
 0x230   :  { %v350_v0 = vsel %vm349_vm5, %v763_v50, %v346_v61 }
 0x231   :  { %v355_v1 = vsel %vm352_vm6, %v354_v63, %v350_v0 }
 0x232   :  { %v356_v2 = vmul.f32 %v761_v45, %v355_v1  ;;  %v267_v1 = vperm.slane %v1123_v15, 3 }
 0x233   :  { %v765_v3 = vpop.eup %764 }
 0x234   :  { %730 = vmatmul.msk.f32.vlgmr.msrb.gmra.mxu3 %vm323_vm2, %v356_v2  ;;  %v339_v4 = vsel %vm323_vm2, %v765_v3, 0.0  ;;  %v1155_v5 = vpop.eup %766  ;;  %v268_v2 = vadd.f32 %v267_v1, %v1113_v9 }
 0x235   :  { %340 = vadd.xlane.f32.xlu0 %v339_v4  ;;  %v517_v7 = vsel %vm323_vm2, %v1155_v5, 0.0  ;;  %627 = vmatpush.msrb.mxu3 %v266_v36 }
 0x237   :  { %628 = vmatpush.msrb.mxu3 %v265_v62 }
 0x23c   :  { %737 = vmatmul.msk.f32.vlgmr.msra.gmra.mxu3 %vm270_vm1, %v478_v6 }
 0x23d   :  { %518 = vadd.xlane.f32.xlu0 %v517_v7  ;;  %v269_v7 = vadd.f32 %v267_v1, %v1118_v10 }
 0x2a8   :  { %v341_v12 = vpop.xlane.xlu0 %340 }
 0x2a9   :  { %768 = vrcp.f32 %v341_v12  ;;  %v368_v17 = vand.u32 2147483648, %v341_v12  ;;  %v366_v19 = vand.u32 2147483647, %v341_v12  ;;  %vm362_vm8 = vweird.f32 %v341_v12 }
 0x2ab   :  { %v369_v21 = vor.u32 1.1754944e-38, %v368_v17  ;;  %vm367_vm10 = vcmp.eq.f32.partialorder %v366_v19, 8.507059e+37  ;;  %v1021_v17 = vmov 32.0  }
 0x2af   :  { %v769_v13 = vpop.eup %768 }
 0x2b0   :  { %v358_v14 = vmul.f32 %v769_v13, %v341_v12  ;;  %vm363_vm7 = vweird.f32 %v769_v13  ;;  %v519_v34 = vpop.xlane.xlu0 %518 }
 0x2b1   :  { %vm364_vm9 = vmor %vm362_vm8, %vm363_vm7  ;;  %v534_v48 = vand.u32 2147483648, %v519_v34  ;;  %vm528_vm13 = vweird.f32 %v519_v34  ;;  %v532_v37 = vand.u32 2147483647, %v519_v34 }
 0x2b2   :  { %v359_v16 = vsub.f32 1.0, %v358_v14 }
 0x2b3   :  { %v535_v52 = vor.u32 1.1754944e-38, %v534_v48  ;;  %vm533_vm4 = vcmp.eq.f32.partialorder %v532_v37, 8.507059e+37 }
 0x2b4   :  { %v360_v18 = vmul.f32 %v769_v13, %v359_v16 }
 0x2b6   :  { %v361_v20 = vadd.f32 %v769_v13, %v360_v18 }
 0x2b7   :  { %v392_v22 = vpop.f32.mrf.mxu3 }
 0x2b8   :  { %v365_v23 = vsel %vm364_vm9, %v769_v13, %v361_v20  ;;  %732 = vmatmul.msk.f32.vlgmr.msrb.gmra.mxu1 %vm270_vm1, %v392_v22 }
 0x2b9   :  { %v370_v24 = vsel %vm367_vm10, %v369_v21, %v365_v23 }
 0x2ba   :  { %v371_v25 = vmul.f32 %v765_v3, %v370_v24 }
 0x2bc   :  { %731 = vmatmul.msk.f32.vlgmr.msra.gmra.mxu0 %vm323_vm2, %v371_v25 }
 0x2bf   :  { %v502_v26 = vpop.f32.mrf.mxu3 }
 0x2c0   :  { %v508_v27 = vsel %vm323_vm2, %v502_v26, -inf }
 0x2c1   :  { %509 = vmax.xlane.f32.xlu2 %v508_v27 }
 0x334   :  { %v510_v28 = vpop.xlane.xlu2 %509 }
 0x335   :  { %v512_v29 = vsub.f32 %v502_v26, %v510_v28  ;;  %v441_v3 = vpop.f32.mrf.mxu1 }
 0x336   :  { %v447_v4 = vadd.f32 %v441_v3, %v268_v2 }
 0x337   :  { %v515_v30 = vmul.f32 1.442695, %v512_v29 }
 0x339   :  { %770 = vpow2.f32 %v515_v30  ;;  %v415_v31 = vpop.f32.mrf.mxu0 }
 0x33a   :  { %733 = vmatmul.msk.f32.gmra.mxu1 %vm270_vm1, %v415_v31  ;;  %772 = vrcp.f32 %v519_v34 }
 0x33f   :  { %v771_v32 = vpop.eup %770 }
 0x340   :  { %v520_v33 = vsel %vm323_vm2, %v771_v32, 0.0  ;;  %v773_v39 = vpop.eup %772 }
 0x341   :  { %521 = vadd.xlane.f32.xlu0 %v520_v33  ;;  %v524_v40 = vmul.f32 %v773_v39, %v519_v34  ;;  %vm529_vm11 = vweird.f32 %v773_v39 }
 0x342   :  { %vm530_vm14 = vmor %vm528_vm13, %vm529_vm11 }
 0x343   :  { %v525_v42 = vsub.f32 1.0, %v524_v40 }
 0x345   :  { %v526_v44 = vmul.f32 %v773_v39, %v525_v42 }
 0x347   :  { %v527_v47 = vadd.f32 %v773_v39, %v526_v44 }
 0x349   :  { %v531_v51 = vsel %vm530_vm14, %v773_v39, %v527_v47 }
 0x34a   :  { %v536_v55 = vsel %vm533_vm4, %v535_v52, %v531_v51 }
 0x34b   :  { %v537_v60 = vmul.f32 %v1155_v5, %v536_v55 }
 0x355   :  { %756 = vrot.lane.b32.xlu0 %v755_v38, %s1020_s7 }
 0x3b4   :  { %v522_v41 = vpop.xlane.xlu0 %521 }
 0x3b5   :  { %774 = vrcp.f32 %v522_v41  ;;  %v549_v35 = vand.u32 2147483648, %v522_v41  ;;  %v547_v38 = vand.u32 2147483647, %v522_v41  ;;  %vm543_vm15 = vweird.f32 %v522_v41 }
 0x3b6   :  { %776 = vrcp.f32 %v1021_v17 }
 0x3b7   :  { %v550_v54 = vor.u32 1.1754944e-38, %v549_v35  ;;  %vm548_vm5 = vcmp.eq.f32.partialorder %v547_v38, 8.507059e+37  ;;  %v444_v11 = vpop.f32.mrf.mxu1 }
 0x3b8   :  { %v448_v12 = vadd.f32 %v444_v11, %v269_v7 }
 0x3bb   :  { %v775_v43 = vpop.eup %774 }
 0x3bc   :  { %v539_v45 = vmul.f32 %v775_v43, %v522_v41  ;;  %vm544_vm12 = vweird.f32 %v775_v43  ;;  %v777_v18 = vpop.eup %776 }
 0x3bd   :  { %vm545_vm3 = vmor %vm543_vm15, %vm544_vm12  ;;  %v645_v9 = vmul.f32 32.0, %v777_v18 }
 0x3be   :  { %v540_v46 = vsub.f32 1.0, %v539_v45 }
 0x3bf   :  { %v646_v19 = vsub.f32 1.0, %v645_v9 }
 0x3c0   :  { %v541_v49 = vmul.f32 %v775_v43, %v540_v46 }
 0x3c1   :  { %v647_v20 = vmul.f32 %v777_v18, %v646_v19 }
 0x3c2   :  { %v542_v50 = vadd.f32 %v775_v43, %v541_v49  ;;  %v689_v49 = vperm.slane %v1123_v15, 4 }
 0x3c3   :  { %v648_v21 = vadd.f32 %v777_v18, %v647_v20 }
 0x3c4   :  { %v546_v53 = vsel %vm545_vm3, %v775_v43, %v542_v50  ;;  %v692_v50 = vperm.slane %v1123_v15, 5 }
 0x3c5   :  { %v551_v56 = vsel %vm548_vm5, %v550_v54, %v546_v53 }
 0x3c6   :  { %v552_v61 = vmul.f32 %v771_v32, %v551_v56 }
 0x3c7   :  { %v757_v57 = vpop.permute.xlu0 %756 }
 0x3c8   :  { %v759_v58 = vunpack.i.h.bf16 %v757_v57  ;;  %v758_v59 = vunpack.i.l.bf16 %v757_v57 }
 0x3ca   :  { %575 = vmatpush.msrb.mxu0 %v758_v59  ;;  %602 = vmatpush.msra.mxu2 %v759_v58 }
 0x3cb   :  { %738 = vmatmul.msk.f32.vlgmr.msrb.gmra.mxu0 %vm323_vm2, %v537_v60  ;;  %739 = vmatmul.msk.f32.vlgmr.msra.gmra.mxu2 %vm323_vm2, %v552_v61 }
 0x448   :  { %v577_v63 = vpop.f32.mrf.mxu0 }
 0x449   :  { %740 = vmatmul.msk.f32.vlgmr.msrb.gmra.mxu3 %vm270_vm1, %v577_v63 }
 0x44e   :  { %v604_v0 = vpop.f32.mrf.mxu2 }
 0x451   :  { %741 = vmatmul.msk.f32.gmra.mxu3 %vm270_vm1, %v604_v0  ;;  %vm649_vm1 = vweird.f32 %v777_v18 }
 0x452   :  { %v650_v22 = vsel %vm649_vm1, %v777_v18, %v648_v21 }
 0x4cc   :  { %v630_v5 = vpop.f32.mrf.mxu3 }
 0x4cd   :  { %v636_v6 = vadd.f32 %v630_v5, %v447_v4 }
 0x4cf   :  { %v638_v8 = vsel %vm165_vm0, %v636_v6, 0.0 }
 0x4d0   :  { %639 = vadd.xlane.f32.xlu2 %v638_v8 }
 0x4d4   :  { %v633_v13 = vpop.f32.mrf.mxu3 }
 0x4d5   :  { %v637_v14 = vadd.f32 %v633_v13, %v448_v12 }
 0x4d7   :  { %v641_v16 = vsel %vm165_vm0, %v637_v14, 0.0 }
 0x4d8   :  { %642 = vadd.xlane.f32.xlu1 %v641_v16 }
 0x543   :  { %v640_v10 = vpop.xlane.xlu2 %639 }
 0x544   :  { %v651_v23 = vmul.f32 %v650_v22, %v640_v10 }
 0x546   :  { %v653_v24 = vsub.f32 %v636_v6, %v651_v23 }
 0x548   :  { %v655_v25 = vmul.f32 %v653_v24, %v653_v24 }
 0x54a   :  { %v657_v26 = vsel %vm165_vm0, %v655_v25, 0.0 }
 0x54b   :  { %658 = vadd.xlane.f32.xlu2 %v657_v26  ;;  %v643_v27 = vpop.xlane.xlu1 %642 }
 0x54c   :  { %v652_v28 = vmul.f32 %v650_v22, %v643_v27 }
 0x54e   :  { %v654_v29 = vsub.f32 %v637_v14, %v652_v28 }
 0x550   :  { %v656_v30 = vmul.f32 %v654_v29, %v654_v29 }
 0x552   :  { %v660_v31 = vsel %vm165_vm0, %v656_v30, 0.0 }
 0x553   :  { %661 = vadd.xlane.f32.xlu1 %v660_v31 }
 0x5be   :  { %v659_v32 = vpop.xlane.xlu2 %658 }
 0x5bf   :  { %v663_v33 = vmul.f32 %v659_v32, %v650_v22 }
 0x5c1   :  { %v665_v34 = vadd.f32 1e-05, %v663_v33 }
 0x5c3   :  { %778 = vrsqrt.f32 %v665_v34  ;;  %vm673_vm6 = vweird.f32 %v665_v34 }
 0x5c6   :  { %v662_v36 = vpop.xlane.xlu1 %661 }
 0x5c7   :  { %v664_v39 = vmul.f32 %v662_v36, %v650_v22 }
 0x5c9   :  { %v779_v40 = vpop.eup %778  ;;  %v666_v41 = vadd.f32 1e-05, %v664_v39 }
 0x5ca   :  { %v668_v42 = vmul.f32 %v779_v40, %v665_v34  ;;  %vm674_vm2 = vweird.f32 %v779_v40 }
 0x5cb   :  { %780 = vrsqrt.f32 %v666_v41  ;;  %vm675_vm7 = vmor %vm673_vm6, %vm674_vm2  ;;  %vm683_vm9 = vweird.f32 %v666_v41 }
 0x5cc   :  { %v669_v43 = vmul.f32 %v779_v40, %v668_v42 }
 0x5ce   :  { %v670_v44 = vmul.f32 0.5, %v669_v43 }
 0x5d0   :  { %v671_v45 = vsub.f32 1.5, %v670_v44 }
 0x5d1   :  { %v781_v46 = vpop.eup %780 }
 0x5d2   :  { %v672_v47 = vmul.f32 %v779_v40, %v671_v45  ;;  %v678_v48 = vmul.f32 %v781_v46, %v666_v41  ;;  %vm684_vm8 = vweird.f32 %v781_v46 }
 0x5d3   :  { %vm685_vm10 = vmor %vm683_vm9, %vm684_vm8 }
 0x5d4   :  { %v676_v35 = vsel %vm675_vm7, %v779_v40, %v672_v47  ;;  %v679_v37 = vmul.f32 %v781_v46, %v678_v48 }
 0x5d5   :  { %v687_v38 = vmul.f32 %v676_v35, %v653_v24 }
 0x5d6   :  { %v680_v51 = vmul.f32 0.5, %v679_v37 }
 0x5d7   :  { %v690_v52 = vmul.f32 %v689_v49, %v687_v38 }
 0x5d8   :  { %v681_v53 = vsub.f32 1.5, %v680_v51 }
 0x5d9   :  { %v693_v54 = vadd.f32 %v692_v50, %v690_v52 }
 0x5da   :  { %v682_v55 = vmul.f32 %v781_v46, %v681_v53 }
 0x5db   :  { %695 = vst.msk [vmem:[#allocation16] sm:$0xff] %vm165_vm0, %v693_v54 }
 0x5dc   :  { %v686_v56 = vsel %vm685_vm10, %v781_v46, %v682_v55 }
 0x5dd   :  { %v688_v57 = vmul.f32 %v686_v56, %v654_v29 }
 0x5df   :  { %v691_v58 = vmul.f32 %v689_v49, %v688_v57 }
 0x5e1   :  { %v694_v15 = vadd.f32 %v692_v50, %v691_v58 }
 0x5e3   :  { %696 = vst.msk [vmem:[#allocation16 + $0x8] sm:$0xff] %vm165_vm0, %v694_v15 }
 0x5e4   :  { %709 = dma.vmem_to_hbm [thread:$0]  %s702_s19, 256, %s704_s22, [#allocation4], %s1011_s13, %s1011_s13, %s1012_s14  }
 0x5e5   :  { %1008 = dma.done.wait [#allocation4], 256  }
 0x5e6   :  { %1009 = vsyncadd [#allocation4], 4294967040 }
 0x5e7   :  { %714 = vsyncpa [#allocation3], 1 }
 0x5e8   :  { %715 = vsyncpa [#allocation6], 1 }
 0x5e9   :  { %716 = vsyncpa [#allocation9], 1 }
 0x5ea   :  { %717 = vsyncpa [#allocation12], 1 }
 0x5eb   :  { %718 = vsyncpa [#allocation15], 1 }
 0x5ec   :  { %719 = vsyncpa [#allocation4], 1 }

</bundles_post_ra>
